<compile_context>
chip_gen: v7x
topology: tpu7x:2x2x1
jax: 0.10.0
libtpu: 0.0.40
codegen_flags: <defaults>
</compile_context>

<pallas_src>
import functools

import jax
import jax.numpy as jnp
from jax.experimental import pallas as pl
from jax.experimental.pallas import tpu as pltpu


def _round_up(x, m):
    return ((x + m - 1) // m) * m


def frn_kernel(eps_ref, x_ref, p_ref, o_ref, *, inv_hw):
    # eps_ref: SMEM (1,) ; x_ref/o_ref: (tile_rows, HW_pad) ; p_ref: (tile_rows, 2)
    x = x_ref[...].astype(jnp.float32)
    # Padded lanes are zero, so sum(x^2) over the padded width equals the sum
    # over the true H*W; divide by the true H*W (compile-time constant).
    nu2 = jnp.sum(x * x, axis=-1, keepdims=True) * inv_hw
    inv = jax.lax.rsqrt(nu2 + jnp.abs(eps_ref[0]))
    p = p_ref[...]                       # (tile_rows, 2): [:,0]=gamma, [:,1]=beta
    gamma = p[:, 0:1]
    beta = p[:, 1:2]
    scale = gamma * inv                  # fuse gamma into the per-row scale
    o_ref[...] = (x * scale + beta).astype(o_ref.dtype)


def frn_forward(x, weight, bias, eps, *, per_tile_x_bytes=4 * 1024 * 1024):
    """x: (B, C, H, W). weight/bias: (1, C, 1, 1). eps: scalar."""
    B, C, H, W = x.shape
    BC, HW = B * C, H * W
    itemsize = jnp.dtype(x.dtype).itemsize
    # Native sublane tile: (8,128) for 32-bit dtypes, (16,128) for 16-bit.
    min_rows = 8 if itemsize >= 4 else 16

    # ---- lane padding: unmasked, lane-dense stores ----
    hw_pad = _round_up(max(HW, 128), 128)
    x2d = x.reshape(BC, HW)
    if hw_pad != HW:
        x2d = jnp.pad(x2d, ((0, 0), (0, hw_pad - HW)))

    # ---- row-tile sizing: ~per_tile_x_bytes of x per tile; double-buffered
    # in + out => ~4x that in VMEM, amortizing the ~0.35 us per-step overhead ----
    rows_budget = max(min_rows, per_tile_x_bytes // (hw_pad * itemsize))
    rows_budget = (rows_budget // min_rows) * min_rows
    bc_min_pad = _round_up(BC, min_rows)
    tile_rows = min(rows_budget, bc_min_pad)
    if tile_rows == bc_min_pad and bc_min_pad >= 2 * min_rows:
        # Keep at least 2 grid steps so v7x's two TensorCores both get work.
        tile_rows = _round_up(-(-bc_min_pad // 2), min_rows)
    # TODO(synk): for very large H*W where a (min_rows, hw_pad) tile no longer
    # fits VMEM, switch to a two-pass (sum-of-squares accumulate over a second
    # "arbitrary" H*W grid axis, then normalize) structure.

    bc_pad = _round_up(BC, tile_rows)
    grid = (bc_pad // tile_rows,)

    # ---- per-row gamma/beta packed into a single (bc_pad, 2) f32 input ----
    g_rows = jnp.broadcast_to(weight.reshape(1, C).astype(jnp.float32), (B, C)).reshape(BC)
    b_rows = jnp.broadcast_to(bias.reshape(1, C).astype(jnp.float32), (B, C)).reshape(BC)
    params = jnp.stack([g_rows, b_rows], axis=-1)           # (BC, 2)
    if bc_pad != BC:
        x2d = jnp.pad(x2d, ((0, bc_pad - BC), (0, 0)))
        params = jnp.pad(params, ((0, bc_pad - BC), (0, 0)))

    eps1 = jnp.asarray(eps, dtype=jnp.float32).reshape(1)

    # Raise the scoped VMEM limit (v5e default is 16 MiB) but stay well under
    # v7x's 64 MiB physical VMEM.
    vmem_limit = 48 * 1024 * 1024

    kernel = functools.partial(frn_kernel, inv_hw=float(1.0 / HW))

    out2d = pl.pallas_call(
        kernel,
        out_shape=jax.ShapeDtypeStruct((bc_pad, hw_pad), x.dtype),
        grid_spec=pltpu.PrefetchScalarGridSpec(
            num_scalar_prefetch=0,
            grid=grid,
            in_specs=[
                pl.BlockSpec(memory_space=pltpu.MemorySpace.SMEM),      # eps (1,)
                pl.BlockSpec((tile_rows, hw_pad), lambda i: (i, 0)),    # x tile
                pl.BlockSpec((tile_rows, 2), lambda i: (i, 0)),         # gamma/beta
            ],
            out_specs=pl.BlockSpec((tile_rows, hw_pad), lambda i: (i, 0)),
        ),
        compiler_params=pltpu.CompilerParams(
            dimension_semantics=("parallel",),
            vmem_limit_bytes=vmem_limit,
        ),
    )(eps1, x2d, params)

    return out2d[:BC, :HW].reshape(B, C, H, W)


def frn_reference(x, weight, bias, eps):
    nu2 = jnp.mean(x ** 2, axis=(2, 3), keepdims=True)
    y = x * jax.lax.rsqrt(nu2 + jnp.abs(eps))
    return weight * y + bias


if __name__ == "__main__":
    key = jax.random.PRNGKey(0)
    k1, k2, k3, k4 = jax.random.split(key, 4)

    eps = jnp.float32(1e-6)

    # Case 1: small aligned shapes (B=2, C=4, 16x16), FRN default params
    # (gamma = ones, beta = zeros).
    B, C, H, W = 2, 4, 16, 16
    x = jax.random.normal(k1, (B, C, H, W), dtype=jnp.float32)
    weight = jnp.ones((1, C, 1, 1), dtype=jnp.float32)
    bias = jnp.zeros((1, C, 1, 1), dtype=jnp.float32)
    out = jax.block_until_ready(frn_forward(x, weight, bias, eps))
    ref = frn_reference(x, weight, bias, eps)
    assert out.shape == (B, C, H, W)
    assert jnp.allclose(out, ref, atol=1e-5, rtol=1e-5), "case 1 mismatch vs reference"

    # Case 2: non-aligned H*W (7x7) and row count (B*C=30), random gamma/beta —
    # exercises lane padding, row-tail padding, and the >=2-grid-step split.
    B2, C2, H2, W2 = 3, 10, 7, 7
    x2 = jax.random.normal(k2, (B2, C2, H2, W2), dtype=jnp.float32)
    w2 = jax.random.normal(k3, (1, C2, 1, 1), dtype=jnp.float32)
    b2 = jax.random.normal(k4, (1, C2, 1, 1), dtype=jnp.float32)
    out2 = jax.block_until_ready(frn_forward(x2, w2, b2, eps))
    ref2 = frn_reference(x2, w2, b2, eps)
    assert out2.shape == (B2, C2, H2, W2)
    assert jnp.allclose(out2, ref2, atol=1e-5, rtol=1e-5), "case 2 mismatch vs reference"

    print("KERNEL_OK")
</pallas_src>

<mosaic_0001>
module attributes {stable_mosaic.version = 11 : i64} {
  func.func @frn_kernel(%arg0: i32, %arg1: memref<1xf32, #tpu.memory_space<smem>>, %arg2: memref<8x256xf32, #tpu.memory_space<vmem>>, %arg3: memref<8x2xf32, #tpu.memory_space<vmem>>, %arg4: memref<8x256xf32, #tpu.memory_space<vmem>>) attributes {dimension_semantics = [#tpu.dimension_semantics<parallel>], iteration_bounds = array<i64: 1>, scalar_prefetch = 0 : i64, scratch_operands = 0 : i64, tpu.core_type = #tpu.core_type<tc>, window_params = [{transform_indices = @transform_0, window_bounds = array<i64: 1>}, {transform_indices = @transform_1, window_bounds = array<i64: 8, 256>}, {transform_indices = @transform_2, window_bounds = array<i64: 8, 2>}, {transform_indices = @transform_3, window_bounds = array<i64: 8, 256>}]} {
    %c0 = arith.constant 0 : index
    %c0_0 = arith.constant 0 : index
    %0 = vector.load %arg2[%c0, %c0_0] : memref<8x256xf32, #tpu.memory_space<vmem>>, vector<8x256xf32>
    %1 = arith.mulf %0, %0 : vector<8x256xf32>
    %cst = arith.constant dense<0.000000e+00> : vector<8xf32>
    %2 = vector.multi_reduction <add>, %1, %cst [1] : vector<8x256xf32> to vector<8xf32>
    %3 = vector.shape_cast %2 : vector<8xf32> to vector<8x1xf32>
    %cst_1 = arith.constant 3.906250e-03 : f32
    %4 = vector.broadcast %cst_1 : f32 to vector<8x1xf32>
    %5 = arith.mulf %3, %4 : vector<8x1xf32>
    %c0_2 = arith.constant 0 : index
    %6 = memref.load %arg1[%c0_2] : memref<1xf32, #tpu.memory_space<smem>>
    %7 = math.absf %6 : f32
    %8 = vector.broadcast %7 : f32 to vector<8x1xf32>
    %9 = arith.addf %5, %8 : vector<8x1xf32>
    %10 = math.rsqrt %9 : vector<8x1xf32>
    %c0_3 = arith.constant 0 : index
    %c0_4 = arith.constant 0 : index
    %11 = vector.load %arg3[%c0_3, %c0_4] : memref<8x2xf32, #tpu.memory_space<vmem>>, vector<8x2xf32>
    %12 = vector.extract_strided_slice %11 {offsets = [0, 0], sizes = [8, 1], strides = [1, 1]} : vector<8x2xf32> to vector<8x1xf32>
    %13 = vector.extract_strided_slice %11 {offsets = [0, 1], sizes = [8, 1], strides = [1, 1]} : vector<8x2xf32> to vector<8x1xf32>
    %14 = arith.mulf %12, %10 : vector<8x1xf32>
    %15 = vector.broadcast %14 : vector<8x1xf32> to vector<8x256xf32>
    %16 = arith.mulf %0, %15 : vector<8x256xf32>
    %17 = vector.broadcast %13 : vector<8x1xf32> to vector<8x256xf32>
    %18 = arith.addf %16, %17 : vector<8x256xf32>
    %c0_5 = arith.constant 0 : index
    %c0_6 = arith.constant 0 : index
    %19 = vector.load %arg4[%c0_5, %c0_6] : memref<8x256xf32, #tpu.memory_space<vmem>>, vector<8x256xf32>
    tpu.vector_store %arg4[%c0_5, %c0_6], %18 {strides = array<i32>} : memref<8x256xf32, #tpu.memory_space<vmem>>, vector<8x256xf32>,
    return
  }
  func.func @transform_0(%arg0: i32) -> i32 {
    %c0_i32 = arith.constant 0 : i32
    %c0_i32_0 = arith.constant 0 : i32
    return %c0_i32 : i32
  }
  func.func @transform_1(%arg0: i32) -> (i32, i32) {
    %c0_i32 = arith.constant 0 : i32
    %c0_i32_0 = arith.constant 0 : i32
    return %arg0, %c0_i32 : i32, i32
  }
  func.func @transform_2(%arg0: i32) -> (i32, i32) {
    %c0_i32 = arith.constant 0 : i32
    %c0_i32_0 = arith.constant 0 : i32
    return %arg0, %c0_i32 : i32, i32
  }
  func.func @transform_3(%arg0: i32) -> (i32, i32) {
    %c0_i32 = arith.constant 0 : i32
    %c0_i32_0 = arith.constant 0 : i32
    return %arg0, %c0_i32 : i32, i32
  }
}

</mosaic_0001>

<bundles_post_ra>
// kernel: tpu_custom_call.1
= control target key start
LH: loop header
LB: loop body
LE: loop exit
PB: predicated region body
PF: predicated region fallthrough
CT: control target
= control target key end

     0   :  { %9 = vsyncpa [#allocation4], 0  ;;  %s185_s0 = inlined_call_operand.<no memory space> [shape: f32[1], index: 0, kind: input, shape index: {}]   ;;  %s186_s1 = inlined_call_operand.hbm [shape: f32[8,256], index: 1, kind: input, shape index: {}]   ;;  %s187_s2 = inlined_call_operand.vmem [shape: f32[8,2], index: 2, kind: input, shape index: {}]   ;;  %s188_s3 = inlined_call_operand.hbm [shape: f32[8,256], index: 3, kind: output, shape index: {}]  }
   0x1   :  { %10 = vsyncpa [#allocation5], 0  ;;  %s131_s12 = smov [#allocation3]   ;;  %s83_s16 = scalar_lea.hbm %s186_s1, 256 }
   0x2   :  { %s19_s13 = sshll.u32 %s131_s12, 4  ;;  %p84_p0 = scmp.ne.s32.totalorder %s186_s1, %s83_s16  ;;  %s20_s13 = int_to_ptr.vmem [resolvable:$true] %s19_s13 }
   0x3   :  { %p87_p1 = scmp.lt.u32.totalorder %s83_s16, %s186_s1 }
   0x5   :  { %p89_p2 = pnand %p87_p1, %p84_p0 }
   0x7   :  { %92 = shalt.err (!%p89_p2)
}
   0x8   :  { %s93_s21 = scalar_lea.vmem %s20_s13, 256  ;;  %p98_p4 = scmp.lt.s32.totalorder %s20_s13, %s20_s13 }
   0x9   :  { %p94_p3 = scmp.ne.s32.totalorder %s20_s13, %s93_s21  ;;  %p99_p5 = scmp.lt.s32.totalorder %s93_s21, %s93_s21 }
   0xb   :  { %p100_p6 = por %p99_p5, %p98_p4 }
   0xd   :  { %p101_p7 = pnand %p100_p6, %p94_p3 }
   0xf   :  { %104 = shalt.err (!%p101_p7)
}
  0x10   :  { %22 = dma.hbm_to_vmem [thread:$0]  %s186_s1, 256, %s20_s13, [#allocation4]  }
  0x11   :  { %127 = dma.done.wait [#allocation4], 256  }
  0x12   :  { %128 = vsyncadd [#allocation4], 4294967040  ;;  %v28_v0 = vld [vmem:[#allocation3] sm:$0xff]  ;;  %v29_v1 = vld [vmem:[#allocation3 + $0x8] sm:$0xff]  ;;  %v132_v5 = vmov 0   ;;  %v133_v7 = vmov 1  }
  0x13   :  { %v30_v2 = vmul.f32 %v28_v0, %v28_v0  ;;  %v31_v3 = vmul.f32 %v29_v1, %v29_v1  ;;  %78 = vset.pattern.permute.xlu0 %v132_v5  ;;  %v41_v6 = vld [vmem:[%s187_s2] sm:$0xff]  ;;  %79 = vset.pattern.permute.xlu1 %v133_v7  ;;  %s37_s1 = sand.u32 2147483647, %s185_s0  ;;  %s134_s28 = smov [#allocation6]  }
  0x14   :  { %52 = vperm.xlu1 %79, %v41_v6   ;;  %v38_v8 = vstv %s37_s1  ;;  %s65_s2 = sshll.u32 %s134_s28, 4  ;;  %s66_s2 = int_to_ptr.vmem [resolvable:$true] %s65_s2 }
  0x15   :  { %v32_v4 = vadd.f32 %v31_v3, %v30_v2  ;;  %s105_s0 = scalar_lea.vmem %s66_s2, 256  ;;  %p110_p9 = scmp.lt.s32.totalorder %s66_s2, %s66_s2 }
  0x16   :  { %p106_p8 = scmp.ne.s32.totalorder %s66_s2, %s105_s0  ;;  %p111_p10 = scmp.lt.s32.totalorder %s105_s0, %s105_s0 }
  0x17   :  { %33 = vadd.xlane.f32.xlu0 %v32_v4 }
  0x18   :  { %p112_p11 = por %p111_p10, %p110_p9 }
  0x1a   :  { %p113_p12 = pnand %p112_p11, %p106_p8 }
  0x93   :  { %v53_v15 = vpop.permute.xlu1 %52 }
  0xa4   :  { %v34_v9 = vpop.xlane.xlu0 %33 }
  0xa5   :  { %v35_v10 = vmul.f32 0.00390625, %v34_v9 }
  0xa7   :  { %v39_v11 = vadd.f32 %v38_v8, %v35_v10 }
  0xa9   :  { %81 = vrsqrt.f32 %v39_v11 }
  0xb3   :  { %v82_v12 = vpop.eup %81 }
  0xb4   :  { %v42_v13 = vmul.f32 %v82_v12, %v41_v6 }
  0xb6   :  { %45 = vperm.xlu0 %78, %v42_v13  }
  0xba   :  { %80 = vset.pattern.permute.xlu0 %v133_v7 }
 0x135   :  { %v46_v14 = vpop.permute.xlu0 %45 }
 0x136   :  { %v48_v16 = vmul.f32 %v46_v14, %v28_v0  ;;  %v49_v17 = vmul.f32 %v46_v14, %v29_v1 }
 0x138   :  { %v55_v18 = vadd.f32 %v53_v15, %v48_v16  ;;  %v56_v19 = vadd.f32 %v53_v15, %v49_v17 }
 0x13a   :  { %57 = vst [vmem:[#allocation6] sm:$0xff] %v55_v18  ;;  %58 = vst [vmem:[#allocation6 + $0x8] sm:$0xff] %v56_v19 }
 0x13b   :  { %116 = shalt.err (!%p113_p12)
}
 0x13c   :  { %s117_s4 = scalar_lea.hbm %s188_s3, 256 }
 0x13d   :  { %p118_p13 = scmp.ne.s32.totalorder %s188_s3, %s117_s4  ;;  %p121_p0 = scmp.lt.u32.totalorder %s117_s4, %s188_s3 }
 0x13f   :  { %p123_p1 = pnand %p121_p0, %p118_p13 }
 0x141   :  { %126 = shalt.err (!%p123_p1)
}
 0x142   :  { %68 = dma.vmem_to_hbm [thread:$0]  %s66_s2, 256, %s188_s3, [#allocation5]  }
 0x143   :  { %129 = dma.done.wait [#allocation5], 256  }
 0x144   :  { %130 = vsyncadd [#allocation5], 4294967040 }
 0x145   :  { %72 = vsyncpa [#allocation4], 1 }
 0x146   :  { %73 = vsyncpa [#allocation5], 1 }

</bundles_post_ra>
